<compile_context>
chip_gen: v7x
topology: tpu7x:2x2x1
jax: 0.10.0
libtpu: 0.0.40
codegen_flags: <defaults>
</compile_context>

<pallas_src>
import math

import jax
import jax.numpy as jnp
from jax.experimental import pallas as pl
from jax.experimental.pallas import tpu as pltpu

INTERMEDIATE_LENGTH = 24                    # embed_dim E
N_HEADS = 8
HEAD_DIM = INTERMEDIATE_LENGTH // N_HEADS   # = 3
N_UNITS = 50


def _spatial_kernel(x_ref, xt_ref, wq_ref, bq_ref, wk_ref, wv_ref,
                    mk_ref, mv_ref, seg_ref, w1_ref, b1_ref, w2_ref, b2_ref,
                    o_ref):
    """Single grid step: all rows + all (tiny) weights resident in VMEM."""
    E, H, Dh = INTERMEDIATE_LENGTH, N_HEADS, HEAD_DIM
    R = x_ref.shape[0]                       # R = N*L rows (batch-major)
    L = seg_ref.shape[0] // H                # rows per batch element
    N = R // L
    f32 = jnp.float32

    x = x_ref[...]                           # (R, E)   row r = n*L + l
    xt = xt_ref[...]                         # (E, R)   same data, transposed
    wq = wq_ref[...]                         # (E, E)   1/sqrt(Dh) pre-folded
    bq = bq_ref[...]                         # (1, E)   scaled Q bias
    wk = wk_ref[...]                         # (E, E)   produces K^T directly
    wv = wv_ref[...]                         # (E, E)
    mk = mk_ref[...]                         # (E, H*L) block-diag mask for K
    mv = mv_ref[...]                         # (H*L, E) block-diag mask for V
    seg = seg_ref[...]                       # (H*L, H*L) segment-sum matrix

    # --- projections: flat matmuls over all N*L rows (no head batching) ---
    q = jnp.dot(x, wq, preferred_element_type=f32) + bq     # (R, E)
    kt = jnp.dot(wk, xt, preferred_element_type=f32)        # (E, R)
    # key bias dropped: it is softmax-invariant (constant per head segment).
    v = jnp.dot(x, wv, preferred_element_type=f32)          # (R, E)
    # value bias folded (via out-proj) into the FF1 bias on the host.

    # --- attention core, block-diagonal form (tiny static unroll over N) ---
    ctx_parts = []
    for n in range(N):
        qn = q[n * L:(n + 1) * L, :]                         # (L, E)
        ktn = kt[:, n * L:(n + 1) * L]                       # (E, L)
        vn = v[n * L:(n + 1) * L, :]                         # (L, E)

        # block-diagonal K: head h occupies rows h*Dh:(h+1)*Dh of lane block h
        kbd = jnp.concatenate([ktn] * H, axis=1) * mk        # (E, H*L)
        s = jnp.dot(qn, kbd, preferred_element_type=f32)     # (L, H*L)

        # global per-row max is constant inside each head segment -> exact softmax
        s = s - jnp.max(s, axis=-1, keepdims=True)
        p = jnp.exp(s)
        # per-head-segment sums, broadcast back to every lane of the segment
        den = jnp.dot(p, seg, preferred_element_type=f32)    # (L, H*L)
        r = pl.reciprocal(den, approx=True)                  # EUP vrcp
        r = r * (2.0 - den * r)                              # one Newton step
        p = p * r

        # block-diagonal V: head h occupies lanes h*Dh:(h+1)*Dh of sublane block h
        vbd = jnp.concatenate([vn] * H, axis=0) * mv         # (H*L, E)
        ctx_parts.append(jnp.dot(p, vbd, preferred_element_type=f32))  # (L, E)

    ctx = jnp.concatenate(ctx_parts, axis=0)                 # (R, E)

    # --- feed-forward (out-projection pre-folded into w1/b1 on the host) ---
    h1 = jnp.maximum(
        jnp.dot(ctx, w1_ref[...], preferred_element_type=f32) + b1_ref[...],
        0.0)                                                 # (R, U)
    out = jnp.dot(h1, w2_ref[...], preferred_element_type=f32) + b2_ref[...]

    o_ref[...] = out.astype(o_ref.dtype)                     # single full store


def pack_params(params):
    """One-time host-side repack of PyTorch-layout weights into kernel layout."""
    inw, inb, outw, outb, w1, b1, w2, b2 = params
    E, U = INTERMEDIATE_LENGTH, N_UNITS
    scale = 1.0 / math.sqrt(HEAD_DIM)

    wq = inw[:E].T * scale                     # (E, E), 1/sqrt(Dh) folded
    bq = (inb[:E] * scale).reshape(1, E)
    wk = inw[E:2 * E]                          # (E, E), used as K^T = wk @ x^T
    wv = inw[2 * E:].T                         # (E, E)
    bv = inb[2 * E:]                           # value bias (folded below)

    wo_t = outw.T                              # (E, E) out-projection
    b_attn = outb + bv @ wo_t                  # (E,)   value + out-proj bias
    w1_eff = wo_t @ w1.T                       # (E, U) out-proj folded into FF1
    b1_eff = (b1 + b_attn @ w1.T).reshape(1, U)
    w2t = w2.T                                 # (U, E)
    b2r = b2.reshape(1, E)
    return (wq, bq, wk, wv, w1_eff, b1_eff, w2t, b2r)


def spatial_module_forward(x_lne, packed_params):
    """x_lne: (L, N, E), PyTorch MultiheadAttention default (seq-first) layout."""
    L, N, E = x_lne.shape
    H, Dh = N_HEADS, HEAD_DIM
    wq, bq, wk, wv, w1e, b1e, w2t, b2r = packed_params

    # Tiny XLA-side layout prep (outside the kernel): batch-major rows + X^T.
    x_nle = jnp.transpose(x_lne, (1, 0, 2))            # (N, L, E)
    x2 = x_nle.reshape(N * L, E)                       # rows r = n*L + l
    xt = jnp.transpose(x2)                             # (E, N*L)

    # Constant block-diagonal / segment-sum matrices for the attention core.
    F = H * L
    e_idx = jnp.arange(E)
    f_idx = jnp.arange(F)
    mk = (e_idx[:, None] // Dh == f_idx[None, :] // L).astype(x_lne.dtype)   # (E, F)
    mv = jnp.transpose(mk)                                                    # (F, E)
    seg = (f_idx[:, None] // L == f_idx[None, :] // L).astype(x_lne.dtype)    # (F, F)

    def full(arr):
        nd = arr.ndim
        return pl.BlockSpec(arr.shape, lambda i, nd=nd: (0,) * nd)

    args = (x2, xt, wq, bq, wk, wv, mk, mv, seg, w1e, b1e, w2t, b2r)

    out2 = pl.pallas_call(
        _spatial_kernel,
        out_shape=jax.ShapeDtypeStruct((N * L, E), x_lne.dtype),
        grid=(1,),
        in_specs=[full(a) for a in args],
        out_specs=pl.BlockSpec((N * L, E), lambda i: (0, 0)),
        compiler_params=pltpu.CompilerParams(
            dimension_semantics=("arbitrary",)),
    )(*args)

    return jnp.transpose(out2.reshape(N, L, E), (1, 0, 2))


def init_params(key):
    """Deterministic synthetic weights with the shapes nn.MultiheadAttention /
    nn.Linear would allocate."""
    E, U = INTERMEDIATE_LENGTH, N_UNITS
    ks = jax.random.split(key, 8)
    s_in = 1.0 / math.sqrt(E)
    s_ff = 1.0 / math.sqrt(U)
    in_proj_w = jax.random.uniform(ks[0], (3 * E, E), jnp.float32, -s_in, s_in)
    in_proj_b = jax.random.uniform(ks[1], (3 * E,), jnp.float32, -s_in, s_in)
    out_proj_w = jax.random.uniform(ks[2], (E, E), jnp.float32, -s_in, s_in)
    out_proj_b = jax.random.uniform(ks[3], (E,), jnp.float32, -s_in, s_in)
    w1 = jax.random.uniform(ks[4], (U, E), jnp.float32, -s_in, s_in)
    b1 = jax.random.uniform(ks[5], (U,), jnp.float32, -s_in, s_in)
    w2 = jax.random.uniform(ks[6], (E, U), jnp.float32, -s_ff, s_ff)
    b2 = jax.random.uniform(ks[7], (E,), jnp.float32, -s_ff, s_ff)
    return (in_proj_w, in_proj_b, out_proj_w, out_proj_b, w1, b1, w2, b2)


def _reference_forward(x_lne, params):
    """Pure-JAX reference mirroring PyTorch eval-mode semantics."""
    inw, inb, outw, outb, w1, b1, w2, b2 = params
    L, N, E = x_lne.shape
    H, Dh = N_HEADS, HEAD_DIM
    hp = jax.lax.Precision.HIGHEST
    qkv = jnp.einsum('lne,fe->lnf', x_lne, inw, precision=hp) + inb
    q, k, v = qkv[..., :E], qkv[..., E:2 * E], qkv[..., 2 * E:]
    qh = q.reshape(L, N, H, Dh)
    kh = k.reshape(L, N, H, Dh)
    vh = v.reshape(L, N, H, Dh)
    s = jnp.einsum('lnhd,mnhd->nhlm', qh, kh, precision=hp) / math.sqrt(Dh)
    p = jax.nn.softmax(s, axis=-1)
    ctx = jnp.einsum('nhlm,mnhd->lnhd', p, vh, precision=hp).reshape(L, N, E)
    attn = jnp.einsum('lne,fe->lnf', ctx, outw, precision=hp) + outb
    h1 = jax.nn.relu(jnp.einsum('lne,ue->lnu', attn, w1, precision=hp) + b1)
    return jnp.einsum('lnu,eu->lne', h1, w2, precision=hp) + b2


if __name__ == "__main__":
    key = jax.random.PRNGKey(0)
    k_x, k_p = jax.random.split(key)

    L, N, E = 8, 2, INTERMEDIATE_LENGTH      # (seq, batch, embed) like PyTorch
    x = jax.random.normal(k_x, (L, N, E), dtype=jnp.float32)
    params = init_params(k_p)
    packed = pack_params(params)

    y = spatial_module_forward(x, packed)
    jax.block_until_ready(y)
    assert y.shape == (L, N, E)

    y_ref = _reference_forward(x, params)
    err = float(jnp.max(jnp.abs(y - y_ref)))
    assert err < 5e-4, f"max abs error vs reference: {err}"
    print("KERNEL_OK")
</pallas_src>

<mosaic_0001>
module attributes {stable_mosaic.version = 11 : i64} {
  func.func @_spatial_kernel(%arg0: i32, %arg1: memref<16x24xf32, #tpu.memory_space<vmem>>, %arg2: memref<24x16xf32, #tpu.memory_space<vmem>>, %arg3: memref<24x24xf32, #tpu.memory_space<vmem>>, %arg4: memref<1x24xf32, #tpu.memory_space<vmem>>, %arg5: memref<24x24xf32, #tpu.memory_space<vmem>>, %arg6: memref<24x24xf32, #tpu.memory_space<vmem>>, %arg7: memref<24x64xf32, #tpu.memory_space<vmem>>, %arg8: memref<64x24xf32, #tpu.memory_space<vmem>>, %arg9: memref<64x64xf32, #tpu.memory_space<vmem>>, %arg10: memref<24x50xf32, #tpu.memory_space<vmem>>, %arg11: memref<1x50xf32, #tpu.memory_space<vmem>>, %arg12: memref<50x24xf32, #tpu.memory_space<vmem>>, %arg13: memref<1x24xf32, #tpu.memory_space<vmem>>, %arg14: memref<16x24xf32, #tpu.memory_space<vmem>>) attributes {dimension_semantics = [#tpu.dimension_semantics<arbitrary>], iteration_bounds = array<i64: 1>, scalar_prefetch = 0 : i64, scratch_operands = 0 : i64, tpu.core_type = #tpu.core_type<tc>, window_params = [{pipeline_mode = #tpu.pipeline_mode<synchronous>, transform_indices = @transform_0, window_bounds = array<i64: 16, 24>}, {pipeline_mode = #tpu.pipeline_mode<synchronous>, transform_indices = @transform_1, window_bounds = array<i64: 24, 16>}, {pipeline_mode = #tpu.pipeline_mode<synchronous>, transform_indices = @transform_2, window_bounds = array<i64: 24, 24>}, {pipeline_mode = #tpu.pipeline_mode<synchronous>, transform_indices = @transform_3, window_bounds = array<i64: 1, 24>}, {pipeline_mode = #tpu.pipeline_mode<synchronous>, transform_indices = @transform_4, window_bounds = array<i64: 24, 24>}, {pipeline_mode = #tpu.pipeline_mode<synchronous>, transform_indices = @transform_5, window_bounds = array<i64: 24, 24>}, {pipeline_mode = #tpu.pipeline_mode<synchronous>, transform_indices = @transform_6, window_bounds = array<i64: 24, 64>}, {pipeline_mode = #tpu.pipeline_mode<synchronous>, transform_indices = @transform_7, window_bounds = array<i64: 64, 24>}, {pipeline_mode = #tpu.pipeline_mode<synchronous>, transform_indices = @transform_8, window_bounds = array<i64: 64, 64>}, {pipeline_mode = #tpu.pipeline_mode<synchronous>, transform_indices = @transform_9, window_bounds = array<i64: 24, 50>}, {pipeline_mode = #tpu.pipeline_mode<synchronous>, transform_indices = @transform_10, window_bounds = array<i64: 1, 50>}, {pipeline_mode = #tpu.pipeline_mode<synchronous>, transform_indices = @transform_11, window_bounds = array<i64: 50, 24>}, {pipeline_mode = #tpu.pipeline_mode<synchronous>, transform_indices = @transform_12, window_bounds = array<i64: 1, 24>}, {pipeline_mode = #tpu.pipeline_mode<synchronous>, transform_indices = @transform_13, window_bounds = array<i64: 16, 24>}]} {
    %c0 = arith.constant 0 : index
    %c0_0 = arith.constant 0 : index
    %0 = vector.load %arg1[%c0, %c0_0] : memref<16x24xf32, #tpu.memory_space<vmem>>, vector<16x24xf32>
    %c0_1 = arith.constant 0 : index
    %c0_2 = arith.constant 0 : index
    %1 = vector.load %arg2[%c0_1, %c0_2] : memref<24x16xf32, #tpu.memory_space<vmem>>, vector<24x16xf32>
    %c0_3 = arith.constant 0 : index
    %c0_4 = arith.constant 0 : index
    %2 = vector.load %arg3[%c0_3, %c0_4] : memref<24x24xf32, #tpu.memory_space<vmem>>, vector<24x24xf32>
    %c0_5 = arith.constant 0 : index
    %c0_6 = arith.constant 0 : index
    %3 = vector.load %arg4[%c0_5, %c0_6] : memref<1x24xf32, #tpu.memory_space<vmem>>, vector<1x24xf32>
    %c0_7 = arith.constant 0 : index
    %c0_8 = arith.constant 0 : index
    %4 = vector.load %arg5[%c0_7, %c0_8] : memref<24x24xf32, #tpu.memory_space<vmem>>, vector<24x24xf32>
    %c0_9 = arith.constant 0 : index
    %c0_10 = arith.constant 0 : index
    %5 = vector.load %arg6[%c0_9, %c0_10] : memref<24x24xf32, #tpu.memory_space<vmem>>, vector<24x24xf32>
    %c0_11 = arith.constant 0 : index
    %c0_12 = arith.constant 0 : index
    %6 = vector.load %arg7[%c0_11, %c0_12] : memref<24x64xf32, #tpu.memory_space<vmem>>, vector<24x64xf32>
    %c0_13 = arith.constant 0 : index
    %c0_14 = arith.constant 0 : index
    %7 = vector.load %arg8[%c0_13, %c0_14] : memref<64x24xf32, #tpu.memory_space<vmem>>, vector<64x24xf32>
    %c0_15 = arith.constant 0 : index
    %c0_16 = arith.constant 0 : index
    %8 = vector.load %arg9[%c0_15, %c0_16] : memref<64x64xf32, #tpu.memory_space<vmem>>, vector<64x64xf32>
    %cst = arith.constant dense<0.000000e+00> : vector<16x24xf32>
    %9 = tpu.matmul %0, %2, %cst {dimension_numbers = #tpu.dot_dimension_numbers<[1], [0], [0], [1], [0, 0, 1, 1], [], []>} : vector<16x24xf32>, vector<24x24xf32>, vector<16x24xf32> -> vector<16x24xf32>
    %10 = vector.broadcast %3 : vector<1x24xf32> to vector<16x24xf32>
    %11 = arith.addf %9, %10 : vector<16x24xf32>
    %cst_17 = arith.constant dense<0.000000e+00> : vector<24x16xf32>
    %12 = tpu.matmul %4, %1, %cst_17 {dimension_numbers = #tpu.dot_dimension_numbers<[1], [0], [0], [1], [0, 0, 1, 1], [], []>} : vector<24x24xf32>, vector<24x16xf32>, vector<24x16xf32> -> vector<24x16xf32>
    %cst_18 = arith.constant dense<0.000000e+00> : vector<16x24xf32>
    %13 = tpu.matmul %0, %5, %cst_18 {dimension_numbers = #tpu.dot_dimension_numbers<[1], [0], [0], [1], [0, 0, 1, 1], [], []>} : vector<16x24xf32>, vector<24x24xf32>, vector<16x24xf32> -> vector<16x24xf32>
    %14 = vector.extract_strided_slice %11 {offsets = [0, 0], sizes = [8, 24], strides = [1, 1]} : vector<16x24xf32> to vector<8x24xf32>
    %15 = vector.extract_strided_slice %12 {offsets = [0, 0], sizes = [24, 8], strides = [1, 1]} : vector<24x16xf32> to vector<24x8xf32>
    %16 = vector.extract_strided_slice %13 {offsets = [0, 0], sizes = [8, 24], strides = [1, 1]} : vector<16x24xf32> to vector<8x24xf32>
    %17 = tpu.concatenate %15, %15, %15, %15, %15, %15, %15, %15 in 1 : vector<24x8xf32>, vector<24x8xf32>, vector<24x8xf32>, vector<24x8xf32>, vector<24x8xf32>, vector<24x8xf32>, vector<24x8xf32>, vector<24x8xf32> -> vector<24x64xf32>
    %18 = arith.mulf %17, %6 : vector<24x64xf32>
    %cst_19 = arith.constant dense<0.000000e+00> : vector<8x64xf32>
    %19 = tpu.matmul %14, %18, %cst_19 {dimension_numbers = #tpu.dot_dimension_numbers<[1], [0], [0], [1], [0, 0, 1, 1], [], []>} : vector<8x24xf32>, vector<24x64xf32>, vector<8x64xf32> -> vector<8x64xf32>
    %cst_20 = arith.constant dense<0xFF800000> : vector<8xf32>
    %20 = vector.multi_reduction <maximumf>, %19, %cst_20 [1] : vector<8x64xf32> to vector<8xf32>
    %21 = vector.shape_cast %20 : vector<8xf32> to vector<8x1xf32>
    %22 = vector.broadcast %21 : vector<8x1xf32> to vector<8x64xf32>
    %23 = arith.subf %19, %22 : vector<8x64xf32>
    %24 = math.exp %23 : vector<8x64xf32>
    %cst_21 = arith.constant dense<0.000000e+00> : vector<8x64xf32>
    %25 = tpu.matmul %24, %8, %cst_21 {dimension_numbers = #tpu.dot_dimension_numbers<[1], [0], [0], [1], [0, 0, 1, 1], [], []>} : vector<8x64xf32>, vector<64x64xf32>, vector<8x64xf32> -> vector<8x64xf32>
    %26 = tpu.reciprocal %25 {approx = true} : vector<8x64xf32> -> vector<8x64xf32>
    %27 = arith.mulf %25, %26 : vector<8x64xf32>
    %cst_22 = arith.constant 2.000000e+00 : f32
    %28 = vector.broadcast %cst_22 : f32 to vector<8x64xf32>
    %29 = arith.subf %28, %27 : vector<8x64xf32>
    %30 = arith.mulf %26, %29 : vector<8x64xf32>
    %31 = arith.mulf %24, %30 : vector<8x64xf32>
    %32 = tpu.concatenate %16, %16, %16, %16, %16, %16, %16, %16 in 0 : vector<8x24xf32>, vector<8x24xf32>, vector<8x24xf32>, vector<8x24xf32>, vector<8x24xf32>, vector<8x24xf32>, vector<8x24xf32>, vector<8x24xf32> -> vector<64x24xf32>
    %33 = arith.mulf %32, %7 : vector<64x24xf32>
    %cst_23 = arith.constant dense<0.000000e+00> : vector<8x24xf32>
    %34 = tpu.matmul %31, %33, %cst_23 {dimension_numbers = #tpu.dot_dimension_numbers<[1], [0], [0], [1], [0, 0, 1, 1], [], []>} : vector<8x64xf32>, vector<64x24xf32>, vector<8x24xf32> -> vector<8x24xf32>
    %35 = vector.extract_strided_slice %11 {offsets = [8, 0], sizes = [8, 24], strides = [1, 1]} : vector<16x24xf32> to vector<8x24xf32>
    %36 = vector.extract_strided_slice %12 {offsets = [0, 8], sizes = [24, 8], strides = [1, 1]} : vector<24x16xf32> to vector<24x8xf32>
    %37 = vector.extract_strided_slice %13 {offsets = [8, 0], sizes = [8, 24], strides = [1, 1]} : vector<16x24xf32> to vector<8x24xf32>
    %38 = tpu.concatenate %36, %36, %36, %36, %36, %36, %36, %36 in 1 : vector<24x8xf32>, vector<24x8xf32>, vector<24x8xf32>, vector<24x8xf32>, vector<24x8xf32>, vector<24x8xf32>, vector<24x8xf32>, vector<24x8xf32> -> vector<24x64xf32>
    %39 = arith.mulf %38, %6 : vector<24x64xf32>
    %cst_24 = arith.constant dense<0.000000e+00> : vector<8x64xf32>
    %40 = tpu.matmul %35, %39, %cst_24 {dimension_numbers = #tpu.dot_dimension_numbers<[1], [0], [0], [1], [0, 0, 1, 1], [], []>} : vector<8x24xf32>, vector<24x64xf32>, vector<8x64xf32> -> vector<8x64xf32>
    %cst_25 = arith.constant dense<0xFF800000> : vector<8xf32>
    %41 = vector.multi_reduction <maximumf>, %40, %cst_25 [1] : vector<8x64xf32> to vector<8xf32>
    %42 = vector.shape_cast %41 : vector<8xf32> to vector<8x1xf32>
    %43 = vector.broadcast %42 : vector<8x1xf32> to vector<8x64xf32>
    %44 = arith.subf %40, %43 : vector<8x64xf32>
    %45 = math.exp %44 : vector<8x64xf32>
    %cst_26 = arith.constant dense<0.000000e+00> : vector<8x64xf32>
    %46 = tpu.matmul %45, %8, %cst_26 {dimension_numbers = #tpu.dot_dimension_numbers<[1], [0], [0], [1], [0, 0, 1, 1], [], []>} : vector<8x64xf32>, vector<64x64xf32>, vector<8x64xf32> -> vector<8x64xf32>
    %47 = tpu.reciprocal %46 {approx = true} : vector<8x64xf32> -> vector<8x64xf32>
    %48 = arith.mulf %46, %47 : vector<8x64xf32>
    %cst_27 = arith.constant 2.000000e+00 : f32
    %49 = vector.broadcast %cst_27 : f32 to vector<8x64xf32>
    %50 = arith.subf %49, %48 : vector<8x64xf32>
    %51 = arith.mulf %47, %50 : vector<8x64xf32>
    %52 = arith.mulf %45, %51 : vector<8x64xf32>
    %53 = tpu.concatenate %37, %37, %37, %37, %37, %37, %37, %37 in 0 : vector<8x24xf32>, vector<8x24xf32>, vector<8x24xf32>, vector<8x24xf32>, vector<8x24xf32>, vector<8x24xf32>, vector<8x24xf32>, vector<8x24xf32> -> vector<64x24xf32>
    %54 = arith.mulf %53, %7 : vector<64x24xf32>
    %cst_28 = arith.constant dense<0.000000e+00> : vector<8x24xf32>
    %55 = tpu.matmul %52, %54, %cst_28 {dimension_numbers = #tpu.dot_dimension_numbers<[1], [0], [0], [1], [0, 0, 1, 1], [], []>} : vector<8x64xf32>, vector<64x24xf32>, vector<8x24xf32> -> vector<8x24xf32>
    %56 = tpu.concatenate %34, %55 in 0 : vector<8x24xf32>, vector<8x24xf32> -> vector<16x24xf32>
    %c0_29 = arith.constant 0 : index
    %c0_30 = arith.constant 0 : index
    %57 = vector.load %arg10[%c0_29, %c0_30] : memref<24x50xf32, #tpu.memory_space<vmem>>, vector<24x50xf32>
    %cst_31 = arith.constant dense<0.000000e+00> : vector<16x50xf32>
    %58 = tpu.matmul %56, %57, %cst_31 {dimension_numbers = #tpu.dot_dimension_numbers<[1], [0], [0], [1], [0, 0, 1, 1], [], []>} : vector<16x24xf32>, vector<24x50xf32>, vector<16x50xf32> -> vector<16x50xf32>
    %c0_32 = arith.constant 0 : index
    %c0_33 = arith.constant 0 : index
    %59 = vector.load %arg11[%c0_32, %c0_33] : memref<1x50xf32, #tpu.memory_space<vmem>>, vector<1x50xf32>
    %60 = vector.broadcast %59 : vector<1x50xf32> to vector<16x50xf32>
    %61 = arith.addf %58, %60 : vector<16x50xf32>
    %cst_34 = arith.constant 0.000000e+00 : f32
    %62 = vector.broadcast %cst_34 : f32 to vector<16x50xf32>
    %63 = arith.maximumf %61, %62 : vector<16x50xf32>
    %c0_35 = arith.constant 0 : index
    %c0_36 = arith.constant 0 : index
    %64 = vector.load %arg12[%c0_35, %c0_36] : memref<50x24xf32, #tpu.memory_space<vmem>>, vector<50x24xf32>
    %cst_37 = arith.constant dense<0.000000e+00> : vector<16x24xf32>
    %65 = tpu.matmul %63, %64, %cst_37 {dimension_numbers = #tpu.dot_dimension_numbers<[1], [0], [0], [1], [0, 0, 1, 1], [], []>} : vector<16x50xf32>, vector<50x24xf32>, vector<16x24xf32> -> vector<16x24xf32>
    %c0_38 = arith.constant 0 : index
    %c0_39 = arith.constant 0 : index
    %66 = vector.load %arg13[%c0_38, %c0_39] : memref<1x24xf32, #tpu.memory_space<vmem>>, vector<1x24xf32>
    %67 = vector.broadcast %66 : vector<1x24xf32> to vector<16x24xf32>
    %68 = arith.addf %65, %67 : vector<16x24xf32>
    %c0_40 = arith.constant 0 : index
    %c0_41 = arith.constant 0 : index
    %69 = vector.load %arg14[%c0_40, %c0_41] : memref<16x24xf32, #tpu.memory_space<vmem>>, vector<16x24xf32>
    tpu.vector_store %arg14[%c0_40, %c0_41], %68 {strides = array<i32>} : memref<16x24xf32, #tpu.memory_space<vmem>>, vector<16x24xf32>,
    return
  }
  func.func @transform_0(%arg0: i32) -> (i32, i32) {
    %c0_i32 = arith.constant 0 : i32
    %c0_i32_0 = arith.constant 0 : i32
    %c0_i32_1 = arith.constant 0 : i32
    return %c0_i32, %c0_i32_0 : i32, i32
  }
  func.func @transform_1(%arg0: i32) -> (i32, i32) {
    %c0_i32 = arith.constant 0 : i32
    %c0_i32_0 = arith.constant 0 : i32
    %c0_i32_1 = arith.constant 0 : i32
    return %c0_i32, %c0_i32_0 : i32, i32
  }
  func.func @transform_2(%arg0: i32) -> (i32, i32) {
    %c0_i32 = arith.constant 0 : i32
    %c0_i32_0 = arith.constant 0 : i32
    %c0_i32_1 = arith.constant 0 : i32
    return %c0_i32, %c0_i32_0 : i32, i32
  }
  func.func @transform_3(%arg0: i32) -> (i32, i32) {
    %c0_i32 = arith.constant 0 : i32
    %c0_i32_0 = arith.constant 0 : i32
    %c0_i32_1 = arith.constant 0 : i32
    return %c0_i32, %c0_i32_0 : i32, i32
  }
  func.func @transform_4(%arg0: i32) -> (i32, i32) {
    %c0_i32 = arith.constant 0 : i32
    %c0_i32_0 = arith.constant 0 : i32
    %c0_i32_1 = arith.constant 0 : i32
    return %c0_i32, %c0_i32_0 : i32, i32
  }
  func.func @transform_5(%arg0: i32) -> (i32, i32) {
    %c0_i32 = arith.constant 0 : i32
    %c0_i32_0 = arith.constant 0 : i32
    %c0_i32_1 = arith.constant 0 : i32
    return %c0_i32, %c0_i32_0 : i32, i32
  }
  func.func @transform_6(%arg0: i32) -> (i32, i32) {
    %c0_i32 = arith.constant 0 : i32
    %c0_i32_0 = arith.constant 0 : i32
    %c0_i32_1 = arith.constant 0 : i32
    return %c0_i32, %c0_i32_0 : i32, i32
  }
  func.func @transform_7(%arg0: i32) -> (i32, i32) {
    %c0_i32 = arith.constant 0 : i32
    %c0_i32_0 = arith.constant 0 : i32
    %c0_i32_1 = arith.constant 0 : i32
    return %c0_i32, %c0_i32_0 : i32, i32
  }
  func.func @transform_8(%arg0: i32) -> (i32, i32) {
    %c0_i32 = arith.constant 0 : i32
    %c0_i32_0 = arith.constant 0 : i32
    %c0_i32_1 = arith.constant 0 : i32
    return %c0_i32, %c0_i32_0 : i32, i32
  }
  func.func @transform_9(%arg0: i32) -> (i32, i32) {
    %c0_i32 = arith.constant 0 : i32
    %c0_i32_0 = arith.constant 0 : i32
    %c0_i32_1 = arith.constant 0 : i32
    return %c0_i32, %c0_i32_0 : i32, i32
  }
  func.func @transform_10(%arg0: i32) -> (i32, i32) {
    %c0_i32 = arith.constant 0 : i32
    %c0_i32_0 = arith.constant 0 : i32
    %c0_i32_1 = arith.constant 0 : i32
    return %c0_i32, %c0_i32_0 : i32, i32
  }
  func.func @transform_11(%arg0: i32) -> (i32, i32) {
    %c0_i32 = arith.constant 0 : i32
    %c0_i32_0 = arith.constant 0 : i32
    %c0_i32_1 = arith.constant 0 : i32
    return %c0_i32, %c0_i32_0 : i32, i32
  }
  func.func @transform_12(%arg0: i32) -> (i32, i32) {
    %c0_i32 = arith.constant 0 : i32
    %c0_i32_0 = arith.constant 0 : i32
    %c0_i32_1 = arith.constant 0 : i32
    return %c0_i32, %c0_i32_0 : i32, i32
  }
  func.func @transform_13(%arg0: i32) -> (i32, i32) {
    %c0_i32 = arith.constant 0 : i32
    %c0_i32_0 = arith.constant 0 : i32
    %c0_i32_1 = arith.constant 0 : i32
    return %c0_i32, %c0_i32_0 : i32, i32
  }
}

</mosaic_0001>

<bundles_post_ra>
// kernel: tpu_custom_call.1
= control target key start
LH: loop header
LB: loop body
LE: loop exit
PB: predicated region body
PF: predicated region fallthrough
CT: control target
= control target key end

     0   :  { %18 = vsyncpa [#allocation3], 0  ;;  %s2051_s0 = inlined_call_operand.hbm [shape: f32[16,24], index: 0, kind: input, shape index: {}]   ;;  %s2052_s1 = inlined_call_operand.vmem [shape: f32[24,16], index: 1, kind: input, shape index: {}]   ;;  %s2053_s2 = inlined_call_operand.vmem [shape: f32[24,24], index: 2, kind: input, shape index: {}]   ;;  %s2054_s3 = inlined_call_operand.vmem [shape: f32[1,24], index: 3, kind: input, shape index: {}]   ;;  %s2055_s4 = inlined_call_operand.vmem [shape: f32[24,24], index: 4, kind: input, shape index: {}]   ;;  %s2056_s5 = inlined_call_operand.vmem [shape: f32[24,24], index: 5, kind: input, shape index: {}]   ;;  %s2057_s6 = inlined_call_operand.vmem [shape: f32[24,64], index: 6, kind: input, shape index: {}]   ;;  %s2058_s7 = inlined_call_operand.vmem [shape: f32[64,24], index: 7, kind: input, shape index: {}]   ;;  %s2059_s8 = inlined_call_operand.vmem [shape: f32[64,64], index: 8, kind: input, shape index: {}]   ;;  %s2060_s9 = inlined_call_operand.vmem [shape: f32[24,50], index: 9, kind: input, shape index: {}]   ;;  %s2061_s10 = inlined_call_operand.vmem [shape: f32[1,50], index: 10, kind: input, shape index: {}]   ;;  %s2062_s11 = inlined_call_operand.vmem [shape: f32[50,24], index: 11, kind: input, shape index: {}]   ;;  %s2063_s12 = inlined_call_operand.vmem [shape: f32[1,24], index: 12, kind: input, shape index: {}]   ;;  %s2064_s13 = inlined_call_operand.hbm [shape: f32[16,24], index: 13, kind: output, shape index: {}]  }
   0x1   :  { %19 = vsyncpa [#allocation4], 0  ;;  %s1562_s25 = smov [#allocation2]   ;;  %s1514_s29 = scalar_lea.hbm %s2051_s0, 256 }
   0x2   :  { %s25_s26 = sshll.u32 %s1562_s25, 4  ;;  %p1515_p0 = scmp.ne.s32.totalorder %s2051_s0, %s1514_s29  ;;  %s26_s26 = int_to_ptr.vmem [resolvable:$true] %s25_s26 }
   0x3   :  { %p1518_p1 = scmp.lt.u32.totalorder %s1514_s29, %s2051_s0 }
   0x5   :  { %p1520_p2 = pnand %p1518_p1, %p1515_p0 }
   0x7   :  { %1523 = shalt.err (!%p1520_p2)
}
   0x8   :  { %s1524_s17 = scalar_lea.vmem %s26_s26, 256  ;;  %p1529_p4 = scmp.lt.s32.totalorder %s26_s26, %s26_s26 }
   0x9   :  { %p1525_p3 = scmp.ne.s32.totalorder %s26_s26, %s1524_s17  ;;  %p1530_p5 = scmp.lt.s32.totalorder %s1524_s17, %s1524_s17 }
   0xb   :  { %p1531_p6 = por %p1530_p5, %p1529_p4 }
   0xd   :  { %p1532_p7 = pnand %p1531_p6, %p1525_p3 }
   0xf   :  { %1535 = shalt.err (!%p1532_p7)
}
  0x10   :  { %s1563_s18 = smov 128   ;;  %s1564_s19 = smov 8  }
  0x11   :  { %31 = dma.hbm_to_vmem [thread:$0]  %s2051_s0, 256, %s26_s26, [#allocation3], %s1563_s18, %s1563_s18, %s1564_s19  }
  0x12   :  { %1558 = dma.done.wait [#allocation3], 256  }
  0x13   :  { %1559 = vsyncadd [#allocation3], 4294967040  ;;  %vm99_vm0 = vcmask 195584   ;;  %v64_v0 = vld [vmem:[%s2053_s2] sm:$0xff]  ;;  %v65_v1 = vld [vmem:[%s2053_s2 + $0x8] sm:$0xff]  ;;  %v1565_v9 = vmov 0.0|0.0  }
  0x14   :  { %v1411_v2 = vpack.c.bf16 %v65_v1, %v64_v0  ;;  %v59_v3 = vld [vmem:[#allocation2] sm:$0xff]  ;;  %v66_v4 = vld [vmem:[%s2053_s2 + $0x10] sm:$0xff]  ;;  %v62_v6 = vld [vmem:[%s2052_s1 + $0x8] sm:$0xff]  ;;  %vm1566_vm1 = vmmov 0   ;;  %v1567_v10 = vmov 0.0   ;;  %s1568_s24 = smov 16  }
  0x15   :  { %1264 = vmatprep.mubr.msk.f32.mxu1 %vm99_vm0, %v59_v3  ;;  %1288 = vmatprep.mubr.msk.f32.mxu0 %vm99_vm0, %v59_v3  ;;  %v61_v5 = vld [vmem:[%s2052_s1] sm:$0xff]  ;;  %v60_v7 = vld [vmem:[#allocation2 + $0x8] sm:$0xff]  ;;  %v63_v11 = vld [vmem:[%s2052_s1 + $0x10] sm:$0xff]  ;;  %s1571_s26 = smov 32   ;;  %s1572_s2 = smov 40   ;;  %vm411_vm2 = vcmask 64512  }
  0x16   :  { %1412 = vmatprep.subr.bf16.mxu1 %v1411_v2  ;;  %v1416_v8 = vpack.c.bf16 %v62_v6, %v61_v5  ;;  %v68_v12 = vld [vmem:[%s2055_s4] sm:$0xff]  ;;  %v69_v13 = vld [vmem:[%s2055_s4 + $0x8] sm:$0xff]  ;;  %v70_v14 = vld [vmem:[%s2055_s4 + $0x10] sm:$0xff]  ;;  %s1570_s4 = smov 24   ;;  %s1573_s14 = smov 48   ;;  %vm415_vm3 = vcmask 130048  }
  0x17   :  { %1414 = vmatpush3.bf16.msra.mxu1 %v1411_v2  ;;  %v1708_v15 = vld [vmem:[%s2054_s3] ss:$0 sm:$0xff]  ;;  %s1569_s3 = smov 56   ;;  %v72_v24 = vld [vmem:[%s2056_s5 + $0x8] sm:$0xff]  ;;  %v73_v28 = vld [vmem:[%s2056_s5 + $0x10] sm:$0xff]  ;;  %vm422_vm4 = vcmask 261120  }
  0x18   :  { %1262 = vmatprep.subr.mxu1 %v66_v4  ;;  %v71_v23 = vld [vmem:[%s2056_s5] sm:$0xff]  ;;  %s1574_s5 = smov 120   ;;  %vm426_vm5 = vcmask 326656   ;;  %vm430_vm6 = vcmask 392192   ;;  %vm434_vm7 = vcmask 457728   ;;  %v75_v56 = vld [vmem:[%s2057_s6 + $0x8] sm:$0xff] }
  0x19   :  { %v1418_v25 = vpack.c.bf16 %v72_v24, %v71_v23  ;;  %v74_v53 = vld [vmem:[%s2057_s6] sm:$0xff]  ;;  %vm514_vm8 = vcmask 523264   ;;  %vm1065_vm9 = vcmask 1041408   ;;  %vm1058_vm10 = vcmask 408576  }
  0x1b   :  { %1263 = vmatpush3.msra.mxu1 %v66_v4  ;;  %1419 = vmatprep.subr.bf16.mxu0 %v1418_v25 }
  0x1c   :  { %1265 = vmatmul.mubr.msk.f32.vlgmr.msra.gmra.mrb[0].mxu1 %vm99_vm0, %v60_v7  ;;  %1415 = vmatprep.subr.bf16.mxu1 %v1565_v9 }
  0x1d   :  { %1417 = vmatpush3.bf16.msra.mxu1 %v1416_v8  ;;  %1273 = vmatprep.mubr.msk.f32.mxu1 %vm1566_vm1, %v1567_v10 }
  0x1e   :  { %1271 = vmatprep.subr.mxu1 %v1567_v10  ;;  %1421 = vmatpush3.bf16.msra.mxu0 %v1418_v25 }
  0x1f   :  { %1286 = vmatprep.subr.mxu0 %v73_v28 }
  0x21   :  { %1272 = vmatpush3.msra.mxu1 %v63_v11  ;;  %v76_v11 = vld [vmem:[%s2057_s6 + $0x10] sm:$0xff] }
  0x22   :  { %1274 = vmatmul.mubr.msk.f32.vlgmr.msra.gmra.mrb[2].mxu1 %vm99_vm0, %v68_v12  ;;  %1425 = vmatprep.subr.bf16.mxu1 %v1565_v9 }
  0x23   :  { %1276 = vmatprep.mubr.msk.f32.mxu1 %vm1566_vm1, %v1567_v10  ;;  %1287 = vmatpush3.msra.mxu0 %v73_v28 }
  0x24   :  { %1289 = vmatmul.mubr.msk.f32.vlgmr.msra.gmra.mrb[0].mxu0 %vm99_vm0, %v60_v7  ;;  %1422 = vmatprep.subr.bf16.mxu0 %v1565_v9 }
  0x25   :  { %1297 = vmatprep.mubr.msk.f32.mxu0 %vm1566_vm1, %v1567_v10 }
  0x26   :  { %1277 = vmatmul.mubr.msk.f32.gmra.mrb[4].mxu1 %vm99_vm0, %v69_v13 }
  0x27   :  { %1279 = vmatprep.mubr.msk.f32.mxu1 %vm1566_vm1, %v1567_v10 }
  0x2a   :  { %1280 = vmatmul.mubr.msk.f32.gmra.mrb[6].mxu1 %vm99_vm0, %v70_v14 }
  0x2b   :  { %1316 = vmatprep.mubr.msk.f32.mxu1 %vm1566_vm1, %v1567_v10 }
  0xef   :  { %v1266_v16 = vpop.f32.mrb[0].mxu1 }
  0xf0   :  { %v1711_v17 = vadd.f32 %v1266_v16, %v1708_v15  ;;  %v1713_v18 = vpop.f32.mrb[1].mxu1 }
  0xf5   :  { %v1715_v19 = vpop.f32.mrb[2].mxu1 }
  0xf6   :  { %357 = vrot.lane.b32.xlu1 %v1715_v19, %s1568_s24  ;;  %348 = vrot.lane.b32.xlu0 %v1715_v19, %s1564_s19  ;;  %v1275_v20 = vpop.f32.mrb[3].mxu1 }
  0xf7   :  { %v173_v20 = vadd.f32 %v1708_v15, %v1713_v18 }
  0xf9   :  { %v1721_v21 = vpop.f32.mrb[4].mxu1 }
  0xfa   :  { %402 = vrot.lane.b32.xlu1 %v1715_v19, %s1569_s3  ;;  %366 = vrot.lane.b32.xlu0 %v1715_v19, %s1570_s4  ;;  %v1278_v22 = vpop.f32.mrb[5].mxu1 }
  0xfd   :  { %v1733_v26 = vpop.f32.mrb[6].mxu1 }
  0xfe   :  { %375 = vrot.lane.b32.xlu0 %v1715_v19, %s1571_s26  ;;  %359 = vrot.lane.b32.xlu1 %v1721_v21, %s1568_s24  ;;  %v1281_v27 = vpop.f32.mrb[7].mxu1 }
 0x102   :  { %384 = vrot.lane.b32.xlu0 %v1715_v19, %s1572_s2  ;;  %368 = vrot.lane.b32.xlu1 %v1721_v21, %s1570_s4 }
 0x106   :  { %393 = vrot.lane.b32.xlu0 %v1715_v19, %s1573_s14  ;;  %377 = vrot.lane.b32.xlu1 %v1721_v21, %s1571_s26 }
 0x10a   :  { %386 = vrot.lane.b32.xlu1 %v1721_v21, %s1572_s2  ;;  %350 = vrot.lane.b32.xlu0 %v1721_v21, %s1564_s19 }
 0x10e   :  { %395 = vrot.lane.b32.xlu1 %v1721_v21, %s1573_s14  ;;  %404 = vrot.lane.b32.xlu0 %v1721_v21, %s1569_s3 }
 0x112   :  { %361 = vrot.lane.b32.xlu1 %v1733_v26, %s1568_s24  ;;  %352 = vrot.lane.b32.xlu0 %v1733_v26, %s1564_s19 }
 0x116   :  { %379 = vrot.lane.b32.xlu1 %v1733_v26, %s1571_s26  ;;  %370 = vrot.lane.b32.xlu0 %v1733_v26, %s1570_s4 }
 0x11a   :  { %397 = vrot.lane.b32.xlu1 %v1733_v26, %s1573_s14  ;;  %388 = vrot.lane.b32.xlu0 %v1733_v26, %s1572_s2 }
 0x11e   :  { %406 = vrot.lane.b32.xlu0 %v1733_v26, %s1569_s3 }
 0x122   :  { %680 = vrot.lane.b32.xlu0 %v1715_v19, %s1574_s5 }
 0x126   :  { %682 = vrot.lane.b32.xlu0 %v1721_v21, %s1574_s5 }
 0x12a   :  { %684 = vrot.lane.b32.xlu0 %v1733_v26, %s1574_s5 }
 0x168   :  { %v1770_v29 = vpop.permute.xlu1 %357  ;;  %v1772_v30 = vpop.permute.xlu0 %348 }
 0x169   :  { %v412_v37 = vsel %vm411_vm2, %v1715_v19, %v1772_v30 }
 0x16a   :  { %v416_v40 = vsel %vm415_vm3, %v412_v37, %v1770_v29 }
 0x16c   :  { %v403_v31 = vpop.permute.xlu1 %402  ;;  %v1774_v32 = vpop.permute.xlu0 %366 }
 0x16d   :  { %v419_v41 = vsel %vm99_vm0, %v416_v40, %v1774_v32 }
 0x170   :  { %v1776_v33 = vpop.permute.xlu0 %375  ;;  %v1778_v34 = vpop.permute.xlu1 %359 }
 0x171   :  { %v423_v42 = vsel %vm422_vm4, %v419_v41, %v1776_v33 }
 0x174   :  { %v1780_v35 = vpop.permute.xlu0 %384  ;;  %v1782_v36 = vpop.permute.xlu1 %368 }
 0x175   :  { %v427_v45 = vsel %vm426_vm5, %v423_v42, %v1780_v35 }
 0x178   :  { %v1787_v38 = vpop.permute.xlu0 %393  ;;  %v1789_v39 = vpop.permute.xlu1 %377 }
 0x179   :  { %v431_v47 = vsel %vm430_vm6, %v427_v45, %v1787_v38 }
 0x17a   :  { %v435_v54 = vsel %vm434_vm7, %v431_v47, %v403_v31  ;;  %v78_v47 = vld [vmem:[%s2058_s7 + $0x8] sm:$0xff] }
 0x17b   :  { %v438_v59 = vmul.f32 %v435_v54, %v74_v53 }
 0x17c   :  { %v387_v43 = vpop.permute.xlu1 %386  ;;  %v351_v44 = vpop.permute.xlu0 %350 }
 0x17d   :  { %v413_v46 = vsel %vm411_vm2, %v1721_v21, %v351_v44 }
 0x17e   :  { %v417_v48 = vsel %vm415_vm3, %v413_v46, %v1778_v34 }
 0x17f   :  { %v420_v49 = vsel %vm99_vm0, %v417_v48, %v1782_v36  ;;  %v79_v48 = vld [vmem:[%s2058_s7 + $0x10] sm:$0xff] }
 0x180   :  { %v396_v50 = vpop.permute.xlu1 %395  ;;  %v424_v51 = vsel %vm422_vm4, %v420_v49, %v1789_v39  ;;  %v405_v52 = vpop.permute.xlu0 %404  ;;  %v80_v49 = vld [vmem:[%s2058_s7 + $0x18] sm:$0xff] }
 0x181   :  { %v428_v55 = vsel %vm426_vm5, %v424_v51, %v387_v43 }
 0x182   :  { %v432_v57 = vsel %vm430_vm6, %v428_v55, %v396_v50 }
 0x183   :  { %v436_v58 = vsel %vm434_vm7, %v432_v57, %v405_v52  ;;  %v82_v57 = vld [vmem:[%s2058_s7 + $0x28] sm:$0xff] }
 0x184   :  { %v439_v60 = vmul.f32 %v436_v58, %v75_v56  ;;  %v362_v61 = vpop.permute.xlu1 %361  ;;  %v353_v62 = vpop.permute.xlu0 %352 }
 0x185   :  { %v414_v63 = vsel %vm411_vm2, %v1733_v26, %v353_v62 }
 0x186   :  { %v1423_v0 = vpack.c.bf16 %v439_v60, %v438_v59  ;;  %v418_v2 = vsel %vm415_vm3, %v414_v63, %v362_v61  ;;  %v83_v63 = vld [vmem:[%s2058_s7 + $0x30] sm:$0xff] }
 0x188   :  { %1424 = vmatpush3.bf16.msra.mxu0 %v1423_v0  ;;  %v380_v1 = vpop.permute.xlu1 %379  ;;  %v371_v3 = vpop.permute.xlu0 %370  ;;  %v84_v0 = vld [vmem:[%s2058_s7 + $0x38] sm:$0xff] }
 0x189   :  { %v421_v4 = vsel %vm99_vm0, %v418_v2, %v371_v3  ;;  %1295 = vmatprep.subr.mxu0 %v1567_v10 }
 0x18a   :  { %v425_v5 = vsel %vm422_vm4, %v421_v4, %v380_v1 }
 0x18c   :  { %v389_v6 = vpop.permute.xlu0 %388  ;;  %v398_v7 = vpop.permute.xlu1 %397 }
 0x18d   :  { %v429_v8 = vsel %vm426_vm5, %v425_v5, %v389_v6 }
 0x18e   :  { %v433_v12 = vsel %vm430_vm6, %v429_v8, %v398_v7 }
 0x190   :  { %v407_v13 = vpop.permute.xlu0 %406 }
 0x191   :  { %v437_v14 = vsel %vm434_vm7, %v433_v12, %v407_v13 }
 0x192   :  { %v440_v16 = vmul.f32 %v437_v14, %v76_v11 }
 0x194   :  { %1296 = vmatpush3.msra.mxu0 %v440_v16  ;;  %v681_v22 = vpop.permute.xlu0 %680 }
 0x195   :  { %v689_v23 = vsel %vm411_vm2, %v681_v22, %v1715_v19  ;;  %1298 = vmatmul.mubr.msk.f32.vlgmr.msra.gmra.mrb[2].mxu0 %vm99_vm0, %v173_v20  ;;  %1437 = vmatprep.subr.bf16.mxu0 %v1565_v9 }
 0x196   :  { %v692_v24 = vsel %vm415_vm3, %v689_v23, %v1772_v30  ;;  %1335 = vmatprep.mubr.msk.f32.mxu0 %vm1566_vm1, %v1567_v10  ;;  %v85_v23 = vld [vmem:[%s2059_s8] sm:$0xff] }
 0x197   :  { %v695_v25 = vsel %vm99_vm0, %v692_v24, %v1770_v29  ;;  %v86_v24 = vld [vmem:[%s2059_s8 + $0x8] sm:$0xff] }
 0x198   :  { %v698_v15 = vsel %vm422_vm4, %v695_v25, %v1774_v32  ;;  %v683_v18 = vpop.permute.xlu0 %682  ;;  %v1426_v25 = vpack.c.bf16 %v86_v24, %v85_v23  ;;  %v1180_v24 = vld [vmem:[%s2063_s12] ss:$0 sm:$0xff] }
 0x199   :  { %v701_v19 = vsel %vm426_vm5, %v698_v15, %v1776_v33  ;;  %v690_v27 = vsel %vm411_vm2, %v683_v18, %v1721_v21 }
 0x19a   :  { %v693_v28 = vsel %vm415_vm3, %v690_v27, %v351_v44  ;;  %v704_v30 = vsel %vm430_vm6, %v701_v19, %v1780_v35  ;;  %1427 = vmatpush3.bf16.msra.mxu1 %v1426_v25  ;;  %v87_v27 = vld [vmem:[%s2059_s8 + $0x10] sm:$0xff] }
 0x19b   :  { %v696_v31 = vsel %vm99_vm0, %v693_v28, %v1778_v34  ;;  %v707_v29 = vsel %vm434_vm7, %v704_v30, %v1787_v38  ;;  %1428 = vmatprep.subr.bf16.mxu1 %v1565_v9  ;;  %v88_v28 = vld [vmem:[%s2059_s8 + $0x18] sm:$0xff] }
 0x19c   :  { %v699_v32 = vsel %vm422_vm4, %v696_v31, %v1782_v36  ;;  %v685_v37 = vpop.permute.xlu0 %684  ;;  %v1858_v40 = vmul.f32 %v707_v29, %v74_v53  ;;  %v1429_v30 = vpack.c.bf16 %v88_v28, %v87_v27  ;;  %v89_v31 = vld [vmem:[%s2059_s8 + $0x20] sm:$0xff]  ;;  %v90_v29 = vld [vmem:[%s2059_s8 + $0x28] sm:$0xff] }
 0x19d   :  { %v702_v21 = vsel %vm426_vm5, %v699_v32, %v1789_v39  ;;  %v691_v33 = vsel %vm411_vm2, %v685_v37, %v1733_v26  ;;  %v91_v32 = vld [vmem:[%s2059_s8 + $0x30] sm:$0xff]  ;;  %v1432_v37 = vpack.c.bf16 %v90_v29, %v89_v31 }
 0x19e   :  { %v694_v35 = vsel %vm415_vm3, %v691_v33, %v353_v62  ;;  %v705_v41 = vsel %vm430_vm6, %v702_v21, %v387_v43  ;;  %v77_v43 = vld [vmem:[%s2058_s7] sm:$0xff]  ;;  %1430 = vmatpush3.bf16.msra.mxu1 %v1429_v30  ;;  %v92_v21 = vld [vmem:[%s2059_s8 + $0x38] sm:$0xff] }
 0x19f   :  { %v697_v34 = vsel %vm99_vm0, %v694_v35, %v362_v61  ;;  %v708_v38 = vsel %vm434_vm7, %v705_v41, %v396_v50  ;;  %v1290_v50 = vpop.f32.mrb[0].mxu0  ;;  %1431 = vmatprep.subr.bf16.mxu1 %v1565_v9  ;;  %v1435_v33 = vpack.c.bf16 %v92_v21, %v91_v32 }
 0x1a0   :  { %v700_v42 = vsel %vm422_vm4, %v697_v34, %v371_v3  ;;  %v1869_v36 = vmul.f32 %v708_v38, %v75_v56  ;;  %v336_v51 = vpop.f32.mrb[1].mxu0  ;;  %v81_v56 = vld [vmem:[%s2058_s7 + $0x20] sm:$0xff]  ;;  %v1904_v3 = vmul.f32 %v1290_v50, %v77_v43  ;;  %v1906_v4 = vmul.f32 %v1290_v50, %v78_v47 }
 0x1a1   :  { %v703_v44 = vsel %vm426_vm5, %v700_v42, %v380_v1  ;;  %v599_v52 = vmul.f32 %v336_v51, %v77_v43  ;;  %v600_v53 = vmul.f32 %v336_v51, %v78_v47  ;;  %v601_v54 = vmul.f32 %v336_v51, %v79_v48 }
 0x1a2   :  { %v1450_v39 = vpack.c.bf16 %v1869_v36, %v1858_v40  ;;  %v706_v45 = vsel %vm430_vm6, %v703_v44, %v389_v6  ;;  %v602_v55 = vmul.f32 %v336_v51, %v80_v49  ;;  %v603_v60 = vmul.f32 %v336_v51, %v81_v56  ;;  %1433 = vmatpush3.bf16.msra.mxu1 %v1432_v37 }
 0x1a3   :  { %v709_v26 = vsel %vm434_vm7, %v706_v45, %v398_v7  ;;  %v1438_v58 = vpack.c.bf16 %v600_v53, %v599_v52  ;;  %v604_v61 = vmul.f32 %v336_v51, %v82_v57  ;;  %v605_v1 = vmul.f32 %v336_v51, %v83_v63  ;;  %1434 = vmatprep.subr.bf16.mxu1 %v1565_v9  ;;  %v951_v52 = vld [vmem:[%s2060_s9] sm:$0xff] }
 0x1a4   :  { %v1876_v46 = vmul.f32 %v709_v26, %v76_v11  ;;  %v1441_v59 = vpack.c.bf16 %v602_v55, %v601_v54  ;;  %v606_v2 = vmul.f32 %v336_v51, %v84_v0  ;;  %v1908_v5 = vmul.f32 %v1290_v50, %v79_v48  ;;  %v953_v54 = vld [vmem:[%s2060_s9 + $0x10] sm:$0xff] }
 0x1a5   :  { %1439 = vmatpush3.bf16.msra.mxu0 %v1438_v58  ;;  %v1444_v62 = vpack.c.bf16 %v604_v61, %v603_v60  ;;  %v1910_v6 = vmul.f32 %v1290_v50, %v80_v49  ;;  %v1913_v8 = vmul.f32 %v1290_v50, %v81_v56  ;;  %v1915_v11 = vmul.f32 %v1290_v50, %v82_v57 }
 0x1a6   :  { %1440 = vmatprep.subr.bf16.mxu0 %v1565_v9  ;;  %v1447_v7 = vpack.c.bf16 %v606_v2, %v605_v1  ;;  %v1917_v12 = vmul.f32 %v1290_v50, %v83_v63  ;;  %v1465_v13 = vpack.c.bf16 %v1906_v4, %v1904_v3  ;;  %v1923_v16 = vmul.f32 %v1290_v50, %v84_v0  ;;  %v1045_v63 = vld [vmem:[%s2062_s11 + $0x8] sm:$0xff]  ;;  %v1046_v0 = vld [vmem:[%s2062_s11 + $0x10] sm:$0xff]  ;;  %v1047_v2 = vld [vmem:[%s2062_s11 + $0x18] sm:$0xff] }
 0x1a7   :  { %v1468_v14 = vpack.c.bf16 %v1910_v6, %v1908_v5  ;;  %v1471_v20 = vpack.c.bf16 %v1915_v11, %v1913_v8  ;;  %1436 = vmatpush3.bf16.msra.mxu1 %v1435_v33  ;;  %v1484_v3 = vpack.c.bf16 %v1047_v2, %v1046_v0  ;;  %v1048_v6 = vld [vmem:[%s2062_s11 + $0x20] sm:$0xff]  ;;  %v1050_v11 = vld [vmem:[%s2062_s11 + $0x30] sm:$0x3] }
 0x1a8   :  { %v1474_v22 = vpack.c.bf16 %v1923_v16, %v1917_v12  ;;  %1449 = vmatprep.subr.bf16.mxu1 %v1565_v9  ;;  %v1177_v12 = vld [vmem:[%s2061_s10] ss:$0 sm:$0xff] }
 0x1a9   :  { %1442 = vmatpush3.bf16.msra.mxu0 %v1441_v59 }
 0x1aa   :  { %1443 = vmatprep.subr.bf16.mxu0 %v1565_v9 }
 0x1ad   :  { %1445 = vmatpush3.bf16.msra.mxu0 %v1444_v62  ;;  %v1044_v62 = vld [vmem:[%s2062_s11] sm:$0xff] }
 0x1ae   :  { %1446 = vmatprep.subr.bf16.mxu0 %v1565_v9  ;;  %v1480_v1 = vpack.c.bf16 %v1045_v63, %v1044_v62 }
 0x1b1   :  { %1448 = vmatpush3.bf16.msra.mxu0 %v1447_v7  ;;  %v1049_v7 = vld [vmem:[%s2062_s11 + $0x28] sm:$0xff]  ;;  %s1575_s11 = smov [#allocation5]  }
 0x1b2   :  { %1464 = vmatprep.subr.bf16.mxu0 %v1565_v9  ;;  %v1488_v8 = vpack.c.bf16 %v1049_v7, %v1048_v6  ;;  %s1151_s28 = sshll.u32 %s1575_s11, 4  ;;  %s1152_s28 = int_to_ptr.vmem [resolvable:$true] %s1151_s28 }
 0x1b3   :  { %s1536_s10 = scalar_lea.vmem %s1152_s28, 256  ;;  %p1541_p9 = scmp.lt.s32.totalorder %s1152_s28, %s1152_s28 }
 0x1b4   :  { %p1537_p8 = scmp.ne.s32.totalorder %s1152_s28, %s1536_s10  ;;  %p1542_p10 = scmp.lt.s32.totalorder %s1536_s10, %s1536_s10 }
 0x1b6   :  { %p1543_p11 = por %p1542_p10, %p1541_p9 }
 0x1b8   :  { %p1544_p12 = pnand %p1543_p11, %p1537_p8 }
 0x268   :  { %v510_v15 = vpop.f32.mrb[2].mxu0 }
 0x269   :  { %v1299_v18 = vpop.f32.mrb[3].mxu0  ;;  %v515_v19 = vsel %vm514_vm8, %v510_v15, -inf }
 0x26a   :  { %516 = vmax.xlane.f32.xlu1 %v515_v19 }
 0x2f7   :  { %v517_v35 = vpop.xlane.xlu1 %516 }
 0x2f8   :  { %v518_v41 = vsub.f32 %v510_v15, %v517_v35 }
 0x2fa   :  { %v519_v34 = vmul.f32 1.442695, %v518_v41 }
 0x2fc   :  { %1506 = vpow2.f32 %v519_v34 }
 0x306   :  { %v1507_v38 = vpop.eup %1506 }
 0x307   :  { %1317 = vmatmul.mubr.msk.f32.vlgmr.msra.gmra.mrb[8].mxu1 %vm514_vm8, %v1507_v38 }
 0x308   :  { %1451 = vmatpush3.bf16.msra.mxu1 %v1450_v39  ;;  %1344 = vmatprep.mubr.msk.f32.mxu1 %vm1566_vm1, %v1567_v10 }
 0x309   :  { %1342 = vmatprep.subr.mxu1 %v1567_v10 }
 0x30c   :  { %1343 = vmatpush3.msra.mxu1 %v1876_v46 }
 0x30d   :  { %1345 = vmatmul.mubr.msk.f32.vlgmr.msra.gmra.mrb[10].mxu1 %vm99_vm0, %v1711_v17  ;;  %1452 = vmatprep.subr.bf16.mxu1 %v1565_v9 }
 0x30e   :  { %1454 = vmatpush3.bf16.msra.mxu1 %v1426_v25  ;;  %1363 = vmatprep.mubr.msk.f32.mxu1 %vm1566_vm1, %v1567_v10 }
 0x30f   :  { %1455 = vmatprep.subr.bf16.mxu1 %v1565_v9 }
 0x312   :  { %1457 = vmatpush3.bf16.msra.mxu1 %v1429_v30 }
 0x313   :  { %1458 = vmatprep.subr.bf16.mxu1 %v1565_v9 }
 0x316   :  { %1460 = vmatpush3.bf16.msra.mxu1 %v1432_v37 }
 0x317   :  { %1461 = vmatprep.subr.bf16.mxu1 %v1565_v9 }
 0x31a   :  { %1463 = vmatpush3.bf16.msra.mxu1 %v1435_v33 }
 0x3da   :  { %v590_v40 = vpop.f32.mrb[8].mxu1 }
 0x3db   :  { %1508 = vrcp.f32 %v590_v40  ;;  %v1318_v42 = vpop.f32.mrb[9].mxu1 }
 0x3e0   :  { %v782_v36 = vpop.f32.mrb[10].mxu1 }
 0x3e1   :  { %v1346_v17 = vpop.f32.mrb[11].mxu1  ;;  %v786_v44 = vsel %vm514_vm8, %v782_v36, -inf }
 0x3e2   :  { %787 = vmax.xlane.f32.xlu0 %v786_v44 }
 0x3e5   :  { %v1509_v39 = vpop.eup %1508 }
 0x3e6   :  { %v595_v45 = vmul.f32 %v1509_v39, %v590_v40 }
 0x3e8   :  { %v596_v26 = vsub.f32 2.0, %v595_v45 }
 0x3ea   :  { %v597_v46 = vmul.f32 %v1509_v39, %v596_v26 }
 0x3ec   :  { %v598_v43 = vmul.f32 %v1507_v38, %v597_v46 }
 0x3ee   :  { %1336 = vmatmul.mubr.msk.f32.vlgmr.msra.gmra.mrb[4].mxu0 %vm514_vm8, %v598_v43 }
 0x3ef   :  { %1466 = vmatpush3.bf16.msra.mxu0 %v1465_v13  ;;  %1382 = vmatprep.mubr.msk.f32.mxu0 %vm1566_vm1, %v1567_v10 }
 0x3f0   :  { %1467 = vmatprep.subr.bf16.mxu0 %v1565_v9 }
 0x3f3   :  { %1469 = vmatpush3.bf16.msra.mxu0 %v1468_v14 }
 0x3f4   :  { %1470 = vmatprep.subr.bf16.mxu0 %v1565_v9 }
 0x3f7   :  { %1472 = vmatpush3.bf16.msra.mxu0 %v1471_v20 }
 0x3f8   :  { %1473 = vmatprep.subr.bf16.mxu0 %v1565_v9  ;;  %v952_v9 = vld [vmem:[%s2060_s9 + $0x8] sm:$0xff] }
 0x3f9   :  { %v1476_v53 = vpack.c.bf16 %v952_v9, %v951_v52 }
 0x3fb   :  { %1475 = vmatpush3.bf16.msra.mxu0 %v1474_v22  ;;  %1477 = vmatprep.subr.bf16.mxu1 %v1476_v53 }
 0x3fc   :  { %1481 = vmatprep.subr.bf16.mxu0 %v1480_v1 }
 0x46f   :  { %v788_v47 = vpop.xlane.xlu0 %787 }
 0x470   :  { %v789_v10 = vsub.f32 %v782_v36, %v788_v47 }
 0x472   :  { %v790_v48 = vmul.f32 1.442695, %v789_v10 }
 0x474   :  { %1510 = vpow2.f32 %v790_v48 }
 0x47e   :  { %v1511_v49 = vpop.eup %1510 }
 0x47f   :  { %1364 = vmatmul.mubr.msk.f32.vlgmr.msra.gmra.mrb[12].mxu1 %vm514_vm8, %v1511_v49 }
 0x480   :  { %1479 = vmatpush3.bf16.msra.mxu1 %v1476_v53 }
 0x481   :  { %1389 = vmatprep.subr.mxu1 %v953_v54 }
 0x484   :  { %1390 = vmatpush3.msra.mxu1 %v953_v54 }
 0x4c1   :  { %v676_v50 = vpop.f32.mrb[4].mxu0 }
 0x4c2   :  { %v1337_v51 = vpop.f32.mrb[5].mxu0  ;;  %1391 = vmatprep.mubr.msk.f32.mxu1 %vm99_vm0, %v676_v50 }
 0x552   :  { %v861_v55 = vpop.f32.mrb[12].mxu1 }
 0x553   :  { %1512 = vrcp.f32 %v861_v55  ;;  %v1365_v56 = vpop.f32.mrb[13].mxu1 }
 0x55d   :  { %v1513_v57 = vpop.eup %1512 }
 0x55e   :  { %v866_v58 = vmul.f32 %v1513_v57, %v861_v55 }
 0x560   :  { %v867_v59 = vsub.f32 2.0, %v866_v58 }
 0x562   :  { %v868_v60 = vmul.f32 %v1513_v57, %v867_v59 }
 0x564   :  { %v869_v61 = vmul.f32 %v1511_v49, %v868_v60 }
 0x566   :  { %1383 = vmatmul.mubr.msk.f32.vlgmr.msra.gmra.mrb[6].mxu0 %vm514_vm8, %v869_v61 }
 0x567   :  { %1483 = vmatpush3.bf16.msra.mxu0 %v1480_v1 }
 0x568   :  { %1485 = vmatprep.subr.bf16.mxu0 %v1484_v3 }
 0x56b   :  { %1487 = vmatpush3.bf16.msra.mxu0 %v1484_v3 }
 0x56c   :  { %1489 = vmatprep.subr.bf16.mxu0 %v1488_v8 }
 0x56f   :  { %1491 = vmatpush3.bf16.msra.mxu0 %v1488_v8 }
 0x570   :  { %1406 = vmatprep.subr.msk.mxu0 %vm1065_vm9, %v1050_v11 }
 0x573   :  { %1407 = vmatpush3.msk.msra.mxu0 %vm1065_vm9, %v1050_v11 }
 0x639   :  { %v947_v4 = vpop.f32.mrb[6].mxu0 }
 0x63a   :  { %v1384_v5 = vpop.f32.mrb[7].mxu0  ;;  %1392 = vmatmul.mubr.msk.f32.vlgmr.msra.gmra.mrb[14].mxu1 %vm99_vm0, %v947_v4 }
 0x70d   :  { %v1393_v13 = vpop.f32.mrb[14].mxu1 }
 0x70e   :  { %v1039_v14 = vadd.f32 %v1393_v13, %v1177_v12  ;;  %v1033_v16 = vpop.f32.mrb[15].mxu1 }
 0x70f   :  { %v1034_v20 = vadd.f32 %v1177_v12, %v1033_v16 }
 0x710   :  { %v1043_v23 = vmax.f32 %v1039_v14, 0.0 }
 0x711   :  { %v1042_v22 = vmax.f32 %v1034_v20, 0.0 }
 0x713   :  { %1408 = vmatprep.mubr.msk.f32.mxu0 %vm1058_vm10, %v1042_v22 }
 0x714   :  { %1409 = vmatmul.mubr.msk.f32.vlgmr.msra.gmra.mrb[8].mxu0 %vm1058_vm10, %v1043_v23 }
 0x7e7   :  { %v1410_v25 = vpop.f32.mrb[8].mxu0 }
 0x7e8   :  { %v1141_v15 = vadd.f32 %v1410_v25, %v1180_v24  ;;  %v1135_v18 = vpop.f32.mrb[9].mxu0 }
 0x7e9   :  { %v1136_v19 = vadd.f32 %v1180_v24, %v1135_v18 }
 0x7ea   :  { %1145 = vst.msk [vmem:[#allocation5 + $0x8] sm:$0xff] %vm99_vm0, %v1141_v15 }
 0x7eb   :  { %1144 = vst.msk [vmem:[#allocation5] sm:$0xff] %vm99_vm0, %v1136_v19 }
 0x7ec   :  { %1547 = shalt.err (!%p1544_p12)
}
 0x7ed   :  { %s1548_s0 = scalar_lea.hbm %s2064_s13, 256 }
 0x7ee   :  { %p1549_p13 = scmp.ne.s32.totalorder %s2064_s13, %s1548_s0  ;;  %p1552_p0 = scmp.lt.u32.totalorder %s1548_s0, %s2064_s13 }
 0x7f0   :  { %p1554_p1 = pnand %p1552_p0, %p1549_p13 }
 0x7f2   :  { %1557 = shalt.err (!%p1554_p1)
}
 0x7f3   :  { %1157 = dma.vmem_to_hbm [thread:$0]  %s1152_s28, 256, %s2064_s13, [#allocation4], %s1563_s18, %s1563_s18, %s1564_s19  }
 0x7f4   :  { %1560 = dma.done.wait [#allocation4], 256  }
 0x7f5   :  { %1561 = vsyncadd [#allocation4], 4294967040 }
 0x7f6   :  { %1161 = vsyncpa [#allocation3], 1 }
 0x7f7   :  { %1162 = vsyncpa [#allocation4], 1 }

</bundles_post_ra>
